<compile_context>
chip_gen: v7x
topology: tpu7x:2x2x1
jax: 0.10.0
libtpu: 0.0.40
codegen_flags: <defaults>
</compile_context>

<pallas_src>
import functools

import jax
import jax.numpy as jnp
from jax.experimental import pallas as pl
from jax.experimental.pallas import tpu as pltpu

EPS = 1e-3  # module: BatchNorm2d(16, eps=0.001)


def _choose_hw_tile(hw, max_elems=32768):
    """Largest lane tile that divides hw, is a multiple of 128 and <= max_elems.
    Falls back to the full extent (always a legal block) if none exists."""
    if hw <= max_elems:
        return hw
    if hw % 128 == 0:
        t = (max_elems // 128) * 128
        while t >= 128:
            if hw % t == 0:
                return t
            t -= 128
    return hw


def _stats_kernel(x_ref, sum_ref, sq_ref):
    # x_ref: (1, CG, T); sum_ref / sq_ref: (CG, 1) resident accumulators
    n = pl.program_id(1)
    t = pl.program_id(2)

    @pl.when((n == 0) & (t == 0))
    def _init():
        sum_ref[...] = jnp.zeros_like(sum_ref)
        sq_ref[...] = jnp.zeros_like(sq_ref)

    x = x_ref[0]  # (CG, T)
    sum_ref[...] += jnp.sum(x, axis=-1, keepdims=True)
    sq_ref[...] += jnp.sum(x * x, axis=-1, keepdims=True)


def _norm_kernel(x_ref, sum_ref, sq_ref, gamma_ref, beta_ref, o_ref, *, inv_m, eps):
    # Tiny (CG, 1) math, then a single fused multiply-add per element.
    mean = sum_ref[...] * inv_m
    var = sq_ref[...] * inv_m - mean * mean  # biased variance
    a = gamma_ref[...] * jax.lax.rsqrt(var + eps)
    b = beta_ref[...] - mean * a
    o_ref[0] = x_ref[0] * a + b


def batchnorm2d(x_nchw, gamma, beta, eps=EPS):
    """x_nchw: (N, C, H, W) float32; gamma, beta: (C,) float32."""
    N, C, H, W = x_nchw.shape
    HW = H * W
    M = N * HW

    x3d = x_nchw.reshape(N, C, HW)  # free reshape, no transpose
    g2d = gamma.reshape(C, 1).astype(jnp.float32)
    b2d = beta.reshape(C, 1).astype(jnp.float32)

    # Channel-group grid axis (parallel; lets v7x's 2 TensorCores split work).
    CG = 8 if (C % 8 == 0 and C > 8) else C
    G = C // CG
    T = _choose_hw_tile(HW)
    n_t = HW // T
    grid = (G, N, n_t)

    # ---- pass 1: per-channel sum and sum-of-squares --------------------------
    sums, sqs = pl.pallas_call(
        _stats_kernel,
        out_shape=(jax.ShapeDtypeStruct((C, 1), jnp.float32),
                   jax.ShapeDtypeStruct((C, 1), jnp.float32)),
        grid_spec=pltpu.PrefetchScalarGridSpec(
            num_scalar_prefetch=0,
            grid=grid,
            in_specs=[pl.BlockSpec((1, CG, T), lambda g, n, t: (n, g, t))],
            out_specs=(pl.BlockSpec((CG, 1), lambda g, n, t: (g, 0)),
                       pl.BlockSpec((CG, 1), lambda g, n, t: (g, 0))),
        ),
        compiler_params=pltpu.CompilerParams(
            dimension_semantics=("parallel", "arbitrary", "arbitrary")),
    )(x3d)

    # ---- pass 2: fused normalize  o = x * a + b ------------------------------
    out3d = pl.pallas_call(
        functools.partial(_norm_kernel, inv_m=1.0 / float(M), eps=float(eps)),
        out_shape=jax.ShapeDtypeStruct((N, C, HW), x3d.dtype),
        grid_spec=pltpu.PrefetchScalarGridSpec(
            num_scalar_prefetch=0,
            grid=grid,
            in_specs=[
                pl.BlockSpec((1, CG, T), lambda g, n, t: (n, g, t)),
                pl.BlockSpec((CG, 1), lambda g, n, t: (g, 0)),
                pl.BlockSpec((CG, 1), lambda g, n, t: (g, 0)),
                pl.BlockSpec((CG, 1), lambda g, n, t: (g, 0)),
                pl.BlockSpec((CG, 1), lambda g, n, t: (g, 0)),
            ],
            out_specs=pl.BlockSpec((1, CG, T), lambda g, n, t: (n, g, t)),
        ),
        compiler_params=pltpu.CompilerParams(
            dimension_semantics=("parallel", "parallel", "parallel")),
    )(x3d, sums, sqs, g2d, b2d)

    return out3d.reshape(N, C, H, W)


# TODO(synk): running_mean/running_var (momentum=0.01) side-effect updates are
# not implemented; they do not affect the returned training-mode forward value.

if __name__ == "__main__":
    key = jax.random.PRNGKey(0)
    kx, kg, kb = jax.random.split(key, 3)

    # Shape from the module spec: x1 = torch.randn([1, 16, 112, 112]), C = 16.
    N, C, H, W = 1, 16, 112, 112
    x = jax.random.normal(kx, (N, C, H, W), dtype=jnp.float32)
    gamma = 1.0 + 0.1 * jax.random.normal(kg, (C,), dtype=jnp.float32)
    beta = 0.1 * jax.random.normal(kb, (C,), dtype=jnp.float32)

    y = batchnorm2d(x, gamma, beta)
    jax.block_until_ready(y)

    # Plain-JAX reference (training-mode batchnorm: biased batch variance).
    mean = jnp.mean(x, axis=(0, 2, 3), keepdims=True)
    var = jnp.mean((x - mean) ** 2, axis=(0, 2, 3), keepdims=True)
    ref = (x - mean) * jax.lax.rsqrt(var + EPS) * gamma.reshape(1, C, 1, 1) \
        + beta.reshape(1, C, 1, 1)
    assert jnp.allclose(y, ref, atol=1e-4, rtol=1e-4), "mismatch vs reference"

    print("KERNEL_OK")
</pallas_src>

<mosaic_0001>
module attributes {stable_mosaic.version = 11 : i64} {
  func.func @_stats_kernel(%arg0: i32, %arg1: i32, %arg2: i32, %arg3: memref<1x8x12544xf32, #tpu.memory_space<vmem>>, %arg4: memref<8x1xf32, #tpu.memory_space<vmem>>, %arg5: memref<8x1xf32, #tpu.memory_space<vmem>>) attributes {dimension_semantics = [#tpu.dimension_semantics<parallel>, #tpu.dimension_semantics<arbitrary>, #tpu.dimension_semantics<arbitrary>], iteration_bounds = array<i64: 2, 1, 1>, scalar_prefetch = 0 : i64, scratch_operands = 0 : i64, tpu.core_type = #tpu.core_type<tc>, window_params = [{transform_indices = @transform_0, window_bounds = array<i64: 1, 8, 12544>}, {transform_indices = @transform_1, window_bounds = array<i64: 8, 1>}, {transform_indices = @transform_2, window_bounds = array<i64: 8, 1>}]} {
    %c0_i32 = arith.constant 0 : i32
    %0 = arith.cmpi eq, %arg1, %c0_i32 : i32
    %c0_i32_0 = arith.constant 0 : i32
    %1 = arith.cmpi eq, %arg2, %c0_i32_0 : i32
    %2 = arith.andi %0, %1 : i1
    %3 = arith.extui %2 : i1 to i32
    %c0_i32_1 = arith.constant 0 : i32
    %4 = arith.cmpi ne, %3, %c0_i32_1 : i32
    scf.if %4 {
      %cst_13 = arith.constant 0.000000e+00 : f32
      %18 = vector.broadcast %cst_13 : f32 to vector<8x1xf32>
      %c0_14 = arith.constant 0 : index
      %c0_15 = arith.constant 0 : index
      %19 = vector.load %arg4[%c0_14, %c0_15] : memref<8x1xf32, #tpu.memory_space<vmem>>, vector<8x1xf32>
      tpu.vector_store %arg4[%c0_14, %c0_15], %18 {strides = array<i32>} : memref<8x1xf32, #tpu.memory_space<vmem>>, vector<8x1xf32>,
      %cst_16 = arith.constant 0.000000e+00 : f32
      %20 = vector.broadcast %cst_16 : f32 to vector<8x1xf32>
      %c0_17 = arith.constant 0 : index
      %c0_18 = arith.constant 0 : index
      %21 = vector.load %arg5[%c0_17, %c0_18] : memref<8x1xf32, #tpu.memory_space<vmem>>, vector<8x1xf32>
      tpu.vector_store %arg5[%c0_17, %c0_18], %20 {strides = array<i32>} : memref<8x1xf32, #tpu.memory_space<vmem>>, vector<8x1xf32>,
    } else {
    }
    %c0 = arith.constant 0 : index
    %c0_2 = arith.constant 0 : index
    %c0_3 = arith.constant 0 : index
    %5 = vector.load %arg3[%c0, %c0_2, %c0_3] : memref<1x8x12544xf32, #tpu.memory_space<vmem>>, vector<1x8x12544xf32>
    %6 = vector.shape_cast %5 : vector<1x8x12544xf32> to vector<8x12544xf32>
    %c0_4 = arith.constant 0 : index
    %c0_5 = arith.constant 0 : index
    %7 = vector.load %arg4[%c0_4, %c0_5] : memref<8x1xf32, #tpu.memory_space<vmem>>, vector<8x1xf32>
    %cst = arith.constant dense<0.000000e+00> : vector<8xf32>
    %8 = vector.multi_reduction <add>, %6, %cst [1] : vector<8x12544xf32> to vector<8xf32>
    %9 = vector.shape_cast %8 : vector<8xf32> to vector<8x1xf32>
    %10 = arith.addf %7, %9 : vector<8x1xf32>
    %c0_6 = arith.constant 0 : index
    %c0_7 = arith.constant 0 : index
    %11 = vector.load %arg4[%c0_6, %c0_7] : memref<8x1xf32, #tpu.memory_space<vmem>>, vector<8x1xf32>
    tpu.vector_store %arg4[%c0_6, %c0_7], %10 {strides = array<i32>} : memref<8x1xf32, #tpu.memory_space<vmem>>, vector<8x1xf32>,
    %c0_8 = arith.constant 0 : index
    %c0_9 = arith.constant 0 : index
    %12 = vector.load %arg5[%c0_8, %c0_9] : memref<8x1xf32, #tpu.memory_space<vmem>>, vector<8x1xf32>
    %13 = arith.mulf %6, %6 : vector<8x12544xf32>
    %cst_10 = arith.constant dense<0.000000e+00> : vector<8xf32>
    %14 = vector.multi_reduction <add>, %13, %cst_10 [1] : vector<8x12544xf32> to vector<8xf32>
    %15 = vector.shape_cast %14 : vector<8xf32> to vector<8x1xf32>
    %16 = arith.addf %12, %15 : vector<8x1xf32>
    %c0_11 = arith.constant 0 : index
    %c0_12 = arith.constant 0 : index
    %17 = vector.load %arg5[%c0_11, %c0_12] : memref<8x1xf32, #tpu.memory_space<vmem>>, vector<8x1xf32>
    tpu.vector_store %arg5[%c0_11, %c0_12], %16 {strides = array<i32>} : memref<8x1xf32, #tpu.memory_space<vmem>>, vector<8x1xf32>,
    return
  }
  func.func @transform_0(%arg0: i32, %arg1: i32, %arg2: i32) -> (i32, i32, i32) {
    %c0_i32 = arith.constant 0 : i32
    return %arg1, %arg0, %arg2 : i32, i32, i32
  }
  func.func @transform_1(%arg0: i32, %arg1: i32, %arg2: i32) -> (i32, i32) {
    %c0_i32 = arith.constant 0 : i32
    %c0_i32_0 = arith.constant 0 : i32
    return %arg0, %c0_i32 : i32, i32
  }
  func.func @transform_2(%arg0: i32, %arg1: i32, %arg2: i32) -> (i32, i32) {
    %c0_i32 = arith.constant 0 : i32
    %c0_i32_0 = arith.constant 0 : i32
    return %arg0, %c0_i32 : i32, i32
  }
}

</mosaic_0001>

<bundles_post_ra>
// kernel: tpu_custom_call.1
= control target key start
LH: loop header
LB: loop body
LE: loop exit
PB: predicated region body
PF: predicated region fallthrough
CT: control target
= control target key end

     0   :  { %8 = vsyncpa [#allocation3], 0  ;;  %s1111_s0 = inlined_call_operand.hbm [shape: f32[1,16,12544], index: 0, kind: input, shape index: {}]   ;;  %s1112_s1 = inlined_call_operand.vmem [shape: f32[16,1], index: 1, kind: output, shape index: {0}]   ;;  %s1113_s2 = inlined_call_operand.vmem [shape: f32[16,1], index: 2, kind: output, shape index: {1}]  }
   0x1   :  { %10 = vsyncpa [#allocation3 + $0x1], 0  ;;  %s889_s9 = smov 0   ;;  %s891_s10 = smov 0  }
   0x2   :  { %s893_s11 = smov 0   ;;  %s895_s12 = smov 0  }
   0x3   :  { %s897_s13 = smov 0   ;;  %s899_s14 = smov 0  }
   0x4 LB: > { %s721_s15 = sadd.s32 4294967295, %s870_s14   ;;  %s35_s16 = sadd.s32 1, %s866_s13  ;;  %s870_s14 = sphi %s899_s14, %s16_s14   ;;  %s866_s13 = sphi %s897_s13, %s1122_s13   ;;  %s862_s12 = sphi %s895_s12, %s1121_s12   ;;  %s858_s11 = sphi %s893_s11, %s1120_s11   ;;  %s854_s10 = sphi %s891_s10, %s1119_s10   ;;  %s850_s9 = sphi %s889_s9, %s1118_s9  }
   0x5   : > { %p37_p0 = scmp.ge.s32.totalorder %s35_s16, 2  ;;  %s46_s17 = sadd.s32 1, %s858_s11 }
   0x6   : > { %p53_p1 = scmp.ne.s32.totalorder %s858_s11, %s854_s10  ;;  %p54_p2 = scmp.eq.s32.totalorder %s870_s14, 0 }
   0x7   : > { %s1124_s16 = smov (%p37_p0, %s35_s16), 0  ;;  %p59_p4 = scmp.ne.s32.totalorder %s854_s10, %s850_s9 }
   0x8   : > { %p55_p3 = por %p54_p2, %p53_p1  ;;  %s40_s18 = ssub.s32 %s866_s13, %s1124_s16 }
   0x9   : > { %p60_p5 = scmp.eq.s32.totalorder %s721_s15, 0  ;;  %p44_p6 = scmp.eq.s32.totalorder %s40_s18, 0 }
   0xa   : > { %p740_p8 = scmp.lt.s32.totalorder %s870_s14, 2  ;;  %s135_s21 = sand.u32 1, %s858_s11  }
   0xb   : > { %p928_p7 = por %p60_p5, %p59_p4  ;;  %s732_s22 = smul.u32 12544, %s866_s13 }
   0xc   : > { %s934_s20 = scalar_select %p44_p6, %s858_s11, %s46_s17  }
   0xd   : > { %s731_s23 = smul.u32 784, %s135_s21  ;;  %s941_s26 = scalar_lea.hbm %s1111_s0, %s732_s22 }
   0xe   : > { %p943_p9 = pnand %p740_p8, %p55_p3  ;;  %s136_s30 = scalar_lea.sflag [#allocation3], %s135_s21 }
   0xf   : > { %s139_s28 = scalar_lea.vmem [#allocation2], %s731_s23  ;;  %s790_s3 = scalar_lea.hbm %s941_s26, 12544 }
  0x10   : > { %s151_s29 = sshll.u32 %s139_s28, 4  ;;  %p791_p12 = scmp.ne.s32.totalorder %s941_s26, %s790_s3  ;;  %s948_s29 = int_to_ptr.vmem [resolvable:$true] %s151_s29 }
  0x11   : > { %p792_p13 = pneg %p943_p9  ;;  %s795_s6 = scalar_lea.hbm %s1111_s0, 25088 }
  0x12   : > { %p796_p2 = scmp.lt.u32.totalorder %s941_s26, %s1111_s0  ;;  %p797_p3 = scmp.lt.u32.totalorder %s795_s6, %s790_s3 }
  0x13   : > { %p793_p0 = pnand %p792_p13, %p791_p12  ;;  %p799_p5 = scmp.lt.u32.totalorder %s790_s3, %s941_s26 }
  0x14   : > { %p798_p4 = por %p797_p3, %p796_p2 }
  0x15   : > { %p794_p1 = pneg %p793_p0 }
  0x16   : > { %p800_p6 = por %p799_p5, %p798_p4 }
  0x18   : > { %p801_p8 = pnand %p800_p6, %p794_p1 }
  0x1a   : > { %804 = shalt.err (!%p801_p8)
}
  0x1b   : > { %s805_s9 = scalar_lea.vmem %s948_s29, 12544  ;;  %s872_s15 = smov [#allocation2]  }
  0x1c   : > { %p806_p12 = scmp.ne.s32.totalorder %s948_s29, %s805_s9  ;;  %s810_s17 = sshll.u32 %s872_s15, 4  ;;  %s811_s17 = int_to_ptr.vmem [resolvable:$false] %s810_s17 }
  0x1d   : > { %s812_s18 = scalar_lea.vmem %s811_s17, 25088  ;;  %p813_p11 = scmp.lt.s32.totalorder %s948_s29, %s811_s17 }
  0x1e   : > { %p808_p0 = pnand %p806_p12, %p792_p13  ;;  %p814_p2 = scmp.lt.s32.totalorder %s812_s18, %s805_s9 }
  0x20   : > { %p809_p10 = pneg %p808_p0  ;;  %p815_p3 = por %p814_p2, %p813_p11 }
  0x22   : > { %p816_p4 = pnand %p815_p3, %p809_p10 }
  0x24   : > { %819 = shalt.err (!%p816_p4)
}
  0x25   : > { %739 = dma.hbm_to_vmem [thread:$0]  (!%p943_p9), %s941_s26, 12544, %s948_s29, %s136_s30  }
  0x26   : > { %p1116_p1 = scmp.lt.s32.totalorder %s870_s14, 3  ;;  %p1117_p5 = scmp.ge.s32.totalorder %s870_s14, 1 }
  0x28   : > { %p157_p13 = pnand %p1117_p5, %p1116_p1 }
  0x29   : > { %s162_s21 = sand.u32 (!%p157_p13), 1, %s854_s10  }
  0x2a   : > { %160 = sbr.rel (%p157_p13) target bundleno = 394 (0x18a), region = 24  ;;  %s163_s23 = scalar_lea.sflag (!%p157_p13), [#allocation3], %s162_s21 }
  0x2b   : > { %s733_s22 = smul.u32 (!%p157_p13), 784, %s162_s21 }
  0x2d   : > { %s981_s24 = scalar_lea.vmem (!%p157_p13), [#allocation2], %s733_s22 }
  0x31   : > { %845 = dma.done.wait (%p928_p7), %s163_s23, 12544  }
  0x32   : > { %847 = vsyncadd (%p928_p7), %s163_s23, 4294954752  ;;  %v208_v0 = vld [vmem:[%s981_s24] sm:$0xff]  ;;  %v209_v1 = vld [vmem:[%s981_s24 + $0x8] sm:$0xff]  ;;  %p191_p7 = scmp.lt.s32.totalorder %s862_s12, 1  ;;  %vm205_vm0 = vcmask 7168  }
  0x33   : > { %v210_v2 = vld [vmem:[%s981_s24 + $0x10] sm:$0xff]  ;;  %v307_v3 = vadd.f32 %v209_v1, %v208_v0  ;;  %v410_v4 = vmul.f32 %v208_v0, %v208_v0  ;;  %v411_v5 = vmul.f32 %v209_v1, %v209_v1  ;;  %v211_v6 = vld [vmem:[%s981_s24 + $0x18] sm:$0xff]  ;;  %v212_v9 = vld [vmem:[%s981_s24 + $0x20] sm:$0xff] }
  0x34   : > { %v412_v7 = vmul.f32 %v210_v2, %v210_v2  ;;  %v413_v10 = vmul.f32 %v211_v6, %v211_v6  ;;  %v213_v13 = vld [vmem:[%s981_s24 + $0x28] sm:$0xff]  ;;  %v414_v14 = vmul.f32 %v212_v9, %v212_v9  ;;  %v214_v17 = vld [vmem:[%s981_s24 + $0x30] sm:$0xff]  ;;  %v215_v21 = vld [vmem:[%s981_s24 + $0x38] sm:$0xff]  ;;  %s1126_s12 = smov (!%p191_p7, %s862_s12), 1 }
  0x35   : > { %v308_v8 = vadd.f32 %v307_v3, %v210_v2  ;;  %v508_v11 = vadd.f32 %v411_v5, %v410_v4  ;;  %v415_v18 = vmul.f32 %v213_v13, %v213_v13  ;;  %v416_v22 = vmul.f32 %v214_v17, %v214_v17  ;;  %v216_v25 = vld [vmem:[%s981_s24 + $0x40] sm:$0xff]  ;;  %v217_v29 = vld [vmem:[%s981_s24 + $0x48] sm:$0xff]  ;;  %v218_v33 = vld [vmem:[%s981_s24 + $0x50] sm:$0xff]  ;;  %s727_s19 = sshll.u32 %s1126_s12, 3 }
  0x36   : > { %v417_v26 = vmul.f32 %v215_v21, %v215_v21  ;;  %v418_v30 = vmul.f32 %v216_v25, %v216_v25  ;;  %v419_v34 = vmul.f32 %v217_v29, %v217_v29  ;;  %v219_v37 = vld [vmem:[%s981_s24 + $0x58] sm:$0xff]  ;;  %v420_v38 = vmul.f32 %v218_v33, %v218_v33  ;;  %v220_v41 = vld [vmem:[%s981_s24 + $0x60] sm:$0xff]  ;;  %v221_v45 = vld [vmem:[%s981_s24 + $0x68] sm:$0xff]  ;;  %s194_s27 = scalar_lea.vmem %s1112_s1, %s727_s19  ;;  %s198_s30 = scalar_lea.vmem %s1113_s2, %s727_s19 }
  0x37   : > { %v309_v12 = vadd.f32 %v308_v8, %v211_v6  ;;  %v509_v15 = vadd.f32 %v508_v11, %v412_v7  ;;  %v421_v42 = vmul.f32 %v219_v37, %v219_v37  ;;  %v422_v46 = vmul.f32 %v220_v41, %v220_v41  ;;  %v222_v49 = vld [vmem:[%s981_s24 + $0x70] sm:$0xff]  ;;  %v223_v53 = vld [vmem:[%s981_s24 + $0x78] sm:$0xff]  ;;  %v224_v57 = vld [vmem:[%s981_s24 + $0x80] sm:$0xff] }
  0x38   : > { %v423_v50 = vmul.f32 %v221_v45, %v221_v45  ;;  %v424_v54 = vmul.f32 %v222_v49, %v222_v49  ;;  %v425_v58 = vmul.f32 %v223_v53, %v223_v53  ;;  %v225_v61 = vld [vmem:[%s981_s24 + $0x88] sm:$0xff]  ;;  %v426_v62 = vmul.f32 %v224_v57, %v224_v57  ;;  %v226_v1 = vld [vmem:[%s981_s24 + $0x90] sm:$0xff]  ;;  %v227_v5 = vld [vmem:[%s981_s24 + $0x98] sm:$0xff] }
  0x39   : > { %v310_v16 = vadd.f32 %v309_v12, %v212_v9  ;;  %v510_v19 = vadd.f32 %v509_v15, %v413_v10  ;;  %v427_v2 = vmul.f32 %v225_v61, %v225_v61  ;;  %v428_v6 = vmul.f32 %v226_v1, %v226_v1  ;;  %v228_v9 = vld [vmem:[%s981_s24 + $0xa0] sm:$0xff] }
  0x3a   : > { %v429_v10 = vmul.f32 %v227_v5, %v227_v5 }
  0x3b   : > { %v311_v20 = vadd.f32 %v310_v16, %v213_v13  ;;  %v511_v23 = vadd.f32 %v510_v19, %v414_v14  ;;  %v229_v13 = vld [vmem:[%s981_s24 + $0xa8] sm:$0xff]  ;;  %v430_v14 = vmul.f32 %v228_v9, %v228_v9 }
  0x3d   : > { %v312_v24 = vadd.f32 %v311_v20, %v214_v17  ;;  %v512_v27 = vadd.f32 %v511_v23, %v415_v18  ;;  %v230_v17 = vld [vmem:[%s981_s24 + $0xb0] sm:$0xff]  ;;  %v431_v18 = vmul.f32 %v229_v13, %v229_v13 }
  0x3f   : > { %v313_v28 = vadd.f32 %v312_v24, %v215_v21  ;;  %v513_v31 = vadd.f32 %v512_v27, %v416_v22  ;;  %v231_v21 = vld [vmem:[%s981_s24 + $0xb8] sm:$0xff]  ;;  %v432_v22 = vmul.f32 %v230_v17, %v230_v17 }
  0x41   : > { %v314_v32 = vadd.f32 %v313_v28, %v216_v25  ;;  %v514_v35 = vadd.f32 %v513_v31, %v417_v26  ;;  %v232_v25 = vld [vmem:[%s981_s24 + $0xc0] sm:$0xff]  ;;  %v433_v26 = vmul.f32 %v231_v21, %v231_v21 }
  0x43   : > { %v315_v36 = vadd.f32 %v314_v32, %v217_v29  ;;  %v515_v39 = vadd.f32 %v514_v35, %v418_v30  ;;  %v233_v29 = vld [vmem:[%s981_s24 + $0xc8] sm:$0xff]  ;;  %v434_v30 = vmul.f32 %v232_v25, %v232_v25 }
  0x45   : > { %v316_v40 = vadd.f32 %v315_v36, %v218_v33  ;;  %v516_v43 = vadd.f32 %v515_v39, %v419_v34  ;;  %v234_v33 = vld [vmem:[%s981_s24 + $0xd0] sm:$0xff]  ;;  %v435_v34 = vmul.f32 %v233_v29, %v233_v29 }
  0x47   : > { %v317_v44 = vadd.f32 %v316_v40, %v219_v37  ;;  %v517_v47 = vadd.f32 %v516_v43, %v420_v38  ;;  %v235_v37 = vld [vmem:[%s981_s24 + $0xd8] sm:$0xff]  ;;  %v436_v38 = vmul.f32 %v234_v33, %v234_v33 }
  0x49   : > { %v318_v48 = vadd.f32 %v317_v44, %v220_v41  ;;  %v518_v51 = vadd.f32 %v517_v47, %v421_v42  ;;  %v236_v41 = vld [vmem:[%s981_s24 + $0xe0] sm:$0xff]  ;;  %v437_v42 = vmul.f32 %v235_v37, %v235_v37 }
  0x4b   : > { %v319_v52 = vadd.f32 %v318_v48, %v221_v45  ;;  %v519_v55 = vadd.f32 %v518_v51, %v422_v46  ;;  %v237_v45 = vld [vmem:[%s981_s24 + $0xe8] sm:$0xff]  ;;  %v438_v46 = vmul.f32 %v236_v41, %v236_v41 }
  0x4d   : > { %v320_v56 = vadd.f32 %v319_v52, %v222_v49  ;;  %v520_v59 = vadd.f32 %v519_v55, %v423_v50  ;;  %v238_v49 = vld [vmem:[%s981_s24 + $0xf0] sm:$0xff]  ;;  %v439_v50 = vmul.f32 %v237_v45, %v237_v45 }
  0x4f   : > { %v321_v60 = vadd.f32 %v320_v56, %v223_v53  ;;  %v521_v63 = vadd.f32 %v520_v59, %v424_v54  ;;  %v239_v53 = vld [vmem:[%s981_s24 + $0xf8] sm:$0xff]  ;;  %v440_v54 = vmul.f32 %v238_v49, %v238_v49 }
  0x51   : > { %v322_v0 = vadd.f32 %v321_v60, %v224_v57  ;;  %v522_v3 = vadd.f32 %v521_v63, %v425_v58  ;;  %v240_v57 = vld [vmem:[%s981_s24 + $0x100] sm:$0xff]  ;;  %v441_v58 = vmul.f32 %v239_v53, %v239_v53 }
  0x53   : > { %v323_v4 = vadd.f32 %v322_v0, %v225_v61  ;;  %v523_v7 = vadd.f32 %v522_v3, %v426_v62  ;;  %v241_v61 = vld [vmem:[%s981_s24 + $0x108] sm:$0xff]  ;;  %v442_v62 = vmul.f32 %v240_v57, %v240_v57 }
  0x55   : > { %v324_v8 = vadd.f32 %v323_v4, %v226_v1  ;;  %v524_v11 = vadd.f32 %v523_v7, %v427_v2  ;;  %v242_v1 = vld [vmem:[%s981_s24 + $0x110] sm:$0xff]  ;;  %v443_v2 = vmul.f32 %v241_v61, %v241_v61 }
  0x57   : > { %v325_v12 = vadd.f32 %v324_v8, %v227_v5  ;;  %v525_v15 = vadd.f32 %v524_v11, %v428_v6  ;;  %v243_v5 = vld [vmem:[%s981_s24 + $0x118] sm:$0xff]  ;;  %v444_v6 = vmul.f32 %v242_v1, %v242_v1 }
  0x59   : > { %v326_v16 = vadd.f32 %v325_v12, %v228_v9  ;;  %v526_v19 = vadd.f32 %v525_v15, %v429_v10  ;;  %v244_v9 = vld [vmem:[%s981_s24 + $0x120] sm:$0xff]  ;;  %v445_v10 = vmul.f32 %v243_v5, %v243_v5 }
  0x5b   : > { %v327_v20 = vadd.f32 %v326_v16, %v229_v13  ;;  %v527_v23 = vadd.f32 %v526_v19, %v430_v14  ;;  %v245_v13 = vld [vmem:[%s981_s24 + $0x128] sm:$0xff]  ;;  %v446_v14 = vmul.f32 %v244_v9, %v244_v9 }
  0x5d   : > { %v328_v24 = vadd.f32 %v327_v20, %v230_v17  ;;  %v528_v27 = vadd.f32 %v527_v23, %v431_v18  ;;  %v246_v17 = vld [vmem:[%s981_s24 + $0x130] sm:$0xff]  ;;  %v447_v18 = vmul.f32 %v245_v13, %v245_v13 }
  0x5f   : > { %v329_v28 = vadd.f32 %v328_v24, %v231_v21  ;;  %v529_v31 = vadd.f32 %v528_v27, %v432_v22  ;;  %v247_v21 = vld [vmem:[%s981_s24 + $0x138] sm:$0xff]  ;;  %v448_v22 = vmul.f32 %v246_v17, %v246_v17 }
  0x61   : > { %v330_v32 = vadd.f32 %v329_v28, %v232_v25  ;;  %v530_v35 = vadd.f32 %v529_v31, %v433_v26  ;;  %v248_v25 = vld [vmem:[%s981_s24 + $0x140] sm:$0xff]  ;;  %v449_v26 = vmul.f32 %v247_v21, %v247_v21 }
  0x63   : > { %v331_v36 = vadd.f32 %v330_v32, %v233_v29  ;;  %v531_v39 = vadd.f32 %v530_v35, %v434_v30  ;;  %v249_v29 = vld [vmem:[%s981_s24 + $0x148] sm:$0xff]  ;;  %v450_v30 = vmul.f32 %v248_v25, %v248_v25 }
  0x65   : > { %v332_v40 = vadd.f32 %v331_v36, %v234_v33  ;;  %v532_v43 = vadd.f32 %v531_v39, %v435_v34  ;;  %v250_v33 = vld [vmem:[%s981_s24 + $0x150] sm:$0xff]  ;;  %v451_v34 = vmul.f32 %v249_v29, %v249_v29 }
  0x67   : > { %v333_v44 = vadd.f32 %v332_v40, %v235_v37  ;;  %v533_v47 = vadd.f32 %v532_v43, %v436_v38  ;;  %v251_v37 = vld [vmem:[%s981_s24 + $0x158] sm:$0xff]  ;;  %v452_v38 = vmul.f32 %v250_v33, %v250_v33 }
  0x69   : > { %v334_v48 = vadd.f32 %v333_v44, %v236_v41  ;;  %v534_v51 = vadd.f32 %v533_v47, %v437_v42  ;;  %v252_v41 = vld [vmem:[%s981_s24 + $0x160] sm:$0xff]  ;;  %v453_v42 = vmul.f32 %v251_v37, %v251_v37 }
  0x6b   : > { %v335_v52 = vadd.f32 %v334_v48, %v237_v45  ;;  %v535_v55 = vadd.f32 %v534_v51, %v438_v46  ;;  %v253_v45 = vld [vmem:[%s981_s24 + $0x168] sm:$0xff]  ;;  %v454_v46 = vmul.f32 %v252_v41, %v252_v41 }
  0x6d   : > { %v336_v56 = vadd.f32 %v335_v52, %v238_v49  ;;  %v536_v59 = vadd.f32 %v535_v55, %v439_v50  ;;  %v254_v49 = vld [vmem:[%s981_s24 + $0x170] sm:$0xff]  ;;  %v455_v50 = vmul.f32 %v253_v45, %v253_v45 }
  0x6f   : > { %v337_v60 = vadd.f32 %v336_v56, %v239_v53  ;;  %v537_v63 = vadd.f32 %v536_v59, %v440_v54  ;;  %v255_v53 = vld [vmem:[%s981_s24 + $0x178] sm:$0xff]  ;;  %v456_v54 = vmul.f32 %v254_v49, %v254_v49 }
  0x71   : > { %v338_v0 = vadd.f32 %v337_v60, %v240_v57  ;;  %v538_v3 = vadd.f32 %v537_v63, %v441_v58  ;;  %v256_v57 = vld [vmem:[%s981_s24 + $0x180] sm:$0xff]  ;;  %v457_v58 = vmul.f32 %v255_v53, %v255_v53 }
  0x73   : > { %v339_v4 = vadd.f32 %v338_v0, %v241_v61  ;;  %v539_v7 = vadd.f32 %v538_v3, %v442_v62  ;;  %v257_v61 = vld [vmem:[%s981_s24 + $0x188] sm:$0xff]  ;;  %v458_v62 = vmul.f32 %v256_v57, %v256_v57 }
  0x75   : > { %v340_v8 = vadd.f32 %v339_v4, %v242_v1  ;;  %v540_v11 = vadd.f32 %v539_v7, %v443_v2  ;;  %v258_v1 = vld [vmem:[%s981_s24 + $0x190] sm:$0xff]  ;;  %v459_v2 = vmul.f32 %v257_v61, %v257_v61 }
  0x77   : > { %v341_v12 = vadd.f32 %v340_v8, %v243_v5  ;;  %v541_v15 = vadd.f32 %v540_v11, %v444_v6  ;;  %v259_v5 = vld [vmem:[%s981_s24 + $0x198] sm:$0xff]  ;;  %v460_v6 = vmul.f32 %v258_v1, %v258_v1 }
  0x79   : > { %v342_v16 = vadd.f32 %v341_v12, %v244_v9  ;;  %v542_v19 = vadd.f32 %v541_v15, %v445_v10  ;;  %v260_v9 = vld [vmem:[%s981_s24 + $0x1a0] sm:$0xff]  ;;  %v461_v10 = vmul.f32 %v259_v5, %v259_v5 }
  0x7b   : > { %v343_v20 = vadd.f32 %v342_v16, %v245_v13  ;;  %v543_v23 = vadd.f32 %v542_v19, %v446_v14  ;;  %v261_v13 = vld [vmem:[%s981_s24 + $0x1a8] sm:$0xff]  ;;  %v462_v14 = vmul.f32 %v260_v9, %v260_v9 }
  0x7d   : > { %v344_v24 = vadd.f32 %v343_v20, %v246_v17  ;;  %v544_v27 = vadd.f32 %v543_v23, %v447_v18  ;;  %v262_v17 = vld [vmem:[%s981_s24 + $0x1b0] sm:$0xff]  ;;  %v463_v18 = vmul.f32 %v261_v13, %v261_v13 }
  0x7f   : > { %v345_v28 = vadd.f32 %v344_v24, %v247_v21  ;;  %v545_v31 = vadd.f32 %v544_v27, %v448_v22  ;;  %v263_v21 = vld [vmem:[%s981_s24 + $0x1b8] sm:$0xff]  ;;  %v464_v22 = vmul.f32 %v262_v17, %v262_v17 }
  0x81   : > { %v346_v32 = vadd.f32 %v345_v28, %v248_v25  ;;  %v546_v35 = vadd.f32 %v545_v31, %v449_v26  ;;  %v264_v25 = vld [vmem:[%s981_s24 + $0x1c0] sm:$0xff]  ;;  %v465_v26 = vmul.f32 %v263_v21, %v263_v21 }
  0x83   : > { %v347_v36 = vadd.f32 %v346_v32, %v249_v29  ;;  %v547_v39 = vadd.f32 %v546_v35, %v450_v30  ;;  %v265_v29 = vld [vmem:[%s981_s24 + $0x1c8] sm:$0xff]  ;;  %v466_v30 = vmul.f32 %v264_v25, %v264_v25 }
  0x85   : > { %v348_v40 = vadd.f32 %v347_v36, %v250_v33  ;;  %v548_v43 = vadd.f32 %v547_v39, %v451_v34  ;;  %v266_v33 = vld [vmem:[%s981_s24 + $0x1d0] sm:$0xff]  ;;  %v467_v34 = vmul.f32 %v265_v29, %v265_v29 }
  0x87   : > { %v349_v44 = vadd.f32 %v348_v40, %v251_v37  ;;  %v549_v47 = vadd.f32 %v548_v43, %v452_v38  ;;  %v267_v37 = vld [vmem:[%s981_s24 + $0x1d8] sm:$0xff]  ;;  %v468_v38 = vmul.f32 %v266_v33, %v266_v33 }
  0x89   : > { %v350_v48 = vadd.f32 %v349_v44, %v252_v41  ;;  %v550_v51 = vadd.f32 %v549_v47, %v453_v42  ;;  %v268_v41 = vld [vmem:[%s981_s24 + $0x1e0] sm:$0xff]  ;;  %v469_v42 = vmul.f32 %v267_v37, %v267_v37 }
  0x8b   : > { %v351_v52 = vadd.f32 %v350_v48, %v253_v45  ;;  %v551_v55 = vadd.f32 %v550_v51, %v454_v46  ;;  %v269_v45 = vld [vmem:[%s981_s24 + $0x1e8] sm:$0xff]  ;;  %v470_v46 = vmul.f32 %v268_v41, %v268_v41 }
  0x8d   : > { %v352_v56 = vadd.f32 %v351_v52, %v254_v49  ;;  %v552_v59 = vadd.f32 %v551_v55, %v455_v50  ;;  %v270_v49 = vld [vmem:[%s981_s24 + $0x1f0] sm:$0xff]  ;;  %v471_v50 = vmul.f32 %v269_v45, %v269_v45 }
  0x8f   : > { %v353_v60 = vadd.f32 %v352_v56, %v255_v53  ;;  %v553_v63 = vadd.f32 %v552_v59, %v456_v54  ;;  %v271_v53 = vld [vmem:[%s981_s24 + $0x1f8] sm:$0xff]  ;;  %v472_v54 = vmul.f32 %v270_v49, %v270_v49 }
  0x91   : > { %v354_v0 = vadd.f32 %v353_v60, %v256_v57  ;;  %v554_v3 = vadd.f32 %v553_v63, %v457_v58  ;;  %v272_v57 = vld [vmem:[%s981_s24 + $0x200] sm:$0xff]  ;;  %v473_v58 = vmul.f32 %v271_v53, %v271_v53 }
  0x93   : > { %v355_v4 = vadd.f32 %v354_v0, %v257_v61  ;;  %v555_v7 = vadd.f32 %v554_v3, %v458_v62  ;;  %v273_v61 = vld [vmem:[%s981_s24 + $0x208] sm:$0xff]  ;;  %v474_v62 = vmul.f32 %v272_v57, %v272_v57 }
  0x95   : > { %v356_v8 = vadd.f32 %v355_v4, %v258_v1  ;;  %v556_v11 = vadd.f32 %v555_v7, %v459_v2  ;;  %v274_v1 = vld [vmem:[%s981_s24 + $0x210] sm:$0xff]  ;;  %v475_v2 = vmul.f32 %v273_v61, %v273_v61 }
  0x97   : > { %v357_v12 = vadd.f32 %v356_v8, %v259_v5  ;;  %v557_v15 = vadd.f32 %v556_v11, %v460_v6  ;;  %v275_v5 = vld [vmem:[%s981_s24 + $0x218] sm:$0xff]  ;;  %v476_v6 = vmul.f32 %v274_v1, %v274_v1 }
  0x99   : > { %v358_v16 = vadd.f32 %v357_v12, %v260_v9  ;;  %v558_v19 = vadd.f32 %v557_v15, %v461_v10  ;;  %v276_v9 = vld [vmem:[%s981_s24 + $0x220] sm:$0xff]  ;;  %v477_v10 = vmul.f32 %v275_v5, %v275_v5 }
  0x9b   : > { %v359_v20 = vadd.f32 %v358_v16, %v261_v13  ;;  %v559_v23 = vadd.f32 %v558_v19, %v462_v14  ;;  %v277_v13 = vld [vmem:[%s981_s24 + $0x228] sm:$0xff]  ;;  %v478_v14 = vmul.f32 %v276_v9, %v276_v9 }
  0x9d   : > { %v360_v24 = vadd.f32 %v359_v20, %v262_v17  ;;  %v560_v27 = vadd.f32 %v559_v23, %v463_v18  ;;  %v278_v17 = vld [vmem:[%s981_s24 + $0x230] sm:$0xff]  ;;  %v479_v18 = vmul.f32 %v277_v13, %v277_v13 }
  0x9f   : > { %v361_v28 = vadd.f32 %v360_v24, %v263_v21  ;;  %v561_v31 = vadd.f32 %v560_v27, %v464_v22  ;;  %v279_v21 = vld [vmem:[%s981_s24 + $0x238] sm:$0xff]  ;;  %v480_v22 = vmul.f32 %v278_v17, %v278_v17 }
  0xa1   : > { %v362_v32 = vadd.f32 %v361_v28, %v264_v25  ;;  %v562_v35 = vadd.f32 %v561_v31, %v465_v26  ;;  %v280_v25 = vld [vmem:[%s981_s24 + $0x240] sm:$0xff]  ;;  %v481_v26 = vmul.f32 %v279_v21, %v279_v21 }
  0xa3   : > { %v363_v36 = vadd.f32 %v362_v32, %v265_v29  ;;  %v563_v39 = vadd.f32 %v562_v35, %v466_v30  ;;  %v281_v29 = vld [vmem:[%s981_s24 + $0x248] sm:$0xff]  ;;  %v482_v30 = vmul.f32 %v280_v25, %v280_v25 }
  0xa5   : > { %v364_v40 = vadd.f32 %v363_v36, %v266_v33  ;;  %v564_v43 = vadd.f32 %v563_v39, %v467_v34  ;;  %v282_v33 = vld [vmem:[%s981_s24 + $0x250] sm:$0xff]  ;;  %v483_v34 = vmul.f32 %v281_v29, %v281_v29 }
  0xa7   : > { %v365_v44 = vadd.f32 %v364_v40, %v267_v37  ;;  %v565_v47 = vadd.f32 %v564_v43, %v468_v38  ;;  %v283_v37 = vld [vmem:[%s981_s24 + $0x258] sm:$0xff]  ;;  %v484_v38 = vmul.f32 %v282_v33, %v282_v33 }
  0xa9   : > { %v366_v48 = vadd.f32 %v365_v44, %v268_v41  ;;  %v566_v51 = vadd.f32 %v565_v47, %v469_v42  ;;  %v284_v41 = vld [vmem:[%s981_s24 + $0x260] sm:$0xff]  ;;  %v485_v42 = vmul.f32 %v283_v37, %v283_v37 }
  0xab   : > { %v367_v52 = vadd.f32 %v366_v48, %v269_v45  ;;  %v567_v55 = vadd.f32 %v566_v51, %v470_v46  ;;  %v285_v45 = vld [vmem:[%s981_s24 + $0x268] sm:$0xff]  ;;  %v486_v46 = vmul.f32 %v284_v41, %v284_v41 }
  0xad   : > { %v368_v56 = vadd.f32 %v367_v52, %v270_v49  ;;  %v568_v59 = vadd.f32 %v567_v55, %v471_v50  ;;  %v286_v49 = vld [vmem:[%s981_s24 + $0x270] sm:$0xff]  ;;  %v487_v50 = vmul.f32 %v285_v45, %v285_v45 }
  0xaf   : > { %v369_v60 = vadd.f32 %v368_v56, %v271_v53  ;;  %v569_v63 = vadd.f32 %v568_v59, %v472_v54  ;;  %v287_v53 = vld [vmem:[%s981_s24 + $0x278] sm:$0xff]  ;;  %v488_v54 = vmul.f32 %v286_v49, %v286_v49 }
  0xb1   : > { %v370_v0 = vadd.f32 %v369_v60, %v272_v57  ;;  %v570_v3 = vadd.f32 %v569_v63, %v473_v58  ;;  %v288_v57 = vld [vmem:[%s981_s24 + $0x280] sm:$0xff]  ;;  %v489_v58 = vmul.f32 %v287_v53, %v287_v53 }
  0xb3   : > { %v371_v4 = vadd.f32 %v370_v0, %v273_v61  ;;  %v571_v7 = vadd.f32 %v570_v3, %v474_v62  ;;  %v289_v61 = vld [vmem:[%s981_s24 + $0x288] sm:$0xff]  ;;  %v490_v62 = vmul.f32 %v288_v57, %v288_v57 }
  0xb5   : > { %v372_v8 = vadd.f32 %v371_v4, %v274_v1  ;;  %v572_v11 = vadd.f32 %v571_v7, %v475_v2  ;;  %v290_v1 = vld [vmem:[%s981_s24 + $0x290] sm:$0xff]  ;;  %v491_v2 = vmul.f32 %v289_v61, %v289_v61 }
  0xb7   : > { %v373_v12 = vadd.f32 %v372_v8, %v275_v5  ;;  %v573_v15 = vadd.f32 %v572_v11, %v476_v6  ;;  %v291_v5 = vld [vmem:[%s981_s24 + $0x298] sm:$0xff]  ;;  %v492_v6 = vmul.f32 %v290_v1, %v290_v1 }
  0xb9   : > { %v374_v16 = vadd.f32 %v373_v12, %v276_v9  ;;  %v574_v19 = vadd.f32 %v573_v15, %v477_v10  ;;  %v292_v9 = vld [vmem:[%s981_s24 + $0x2a0] sm:$0xff]  ;;  %v493_v10 = vmul.f32 %v291_v5, %v291_v5 }
  0xbb   : > { %v375_v20 = vadd.f32 %v374_v16, %v277_v13  ;;  %v575_v23 = vadd.f32 %v574_v19, %v478_v14  ;;  %v293_v13 = vld [vmem:[%s981_s24 + $0x2a8] sm:$0xff]  ;;  %v494_v14 = vmul.f32 %v292_v9, %v292_v9 }
  0xbd   : > { %v376_v24 = vadd.f32 %v375_v20, %v278_v17  ;;  %v576_v27 = vadd.f32 %v575_v23, %v479_v18  ;;  %v294_v17 = vld [vmem:[%s981_s24 + $0x2b0] sm:$0xff]  ;;  %v495_v18 = vmul.f32 %v293_v13, %v293_v13 }
  0xbf   : > { %v377_v28 = vadd.f32 %v376_v24, %v279_v21  ;;  %v577_v31 = vadd.f32 %v576_v27, %v480_v22  ;;  %v295_v21 = vld [vmem:[%s981_s24 + $0x2b8] sm:$0xff]  ;;  %v496_v22 = vmul.f32 %v294_v17, %v294_v17 }
  0xc1   : > { %v378_v32 = vadd.f32 %v377_v28, %v280_v25  ;;  %v578_v35 = vadd.f32 %v577_v31, %v481_v26  ;;  %v296_v25 = vld [vmem:[%s981_s24 + $0x2c0] sm:$0xff]  ;;  %v497_v26 = vmul.f32 %v295_v21, %v295_v21 }
  0xc3   : > { %v379_v36 = vadd.f32 %v378_v32, %v281_v29  ;;  %v579_v39 = vadd.f32 %v578_v35, %v482_v30  ;;  %v297_v29 = vld [vmem:[%s981_s24 + $0x2c8] sm:$0xff]  ;;  %v498_v30 = vmul.f32 %v296_v25, %v296_v25 }
  0xc5   : > { %v380_v40 = vadd.f32 %v379_v36, %v282_v33  ;;  %v580_v43 = vadd.f32 %v579_v39, %v483_v34  ;;  %v298_v33 = vld [vmem:[%s981_s24 + $0x2d0] sm:$0xff]  ;;  %v499_v34 = vmul.f32 %v297_v29, %v297_v29 }
  0xc7   : > { %v381_v44 = vadd.f32 %v380_v40, %v283_v37  ;;  %v581_v47 = vadd.f32 %v580_v43, %v484_v38  ;;  %v299_v37 = vld [vmem:[%s981_s24 + $0x2d8] sm:$0xff]  ;;  %v500_v38 = vmul.f32 %v298_v33, %v298_v33 }
  0xc9   : > { %v382_v48 = vadd.f32 %v381_v44, %v284_v41  ;;  %v582_v51 = vadd.f32 %v581_v47, %v485_v42  ;;  %v300_v41 = vld [vmem:[%s981_s24 + $0x2e0] sm:$0xff]  ;;  %v501_v42 = vmul.f32 %v299_v37, %v299_v37 }
  0xcb   : > { %v383_v52 = vadd.f32 %v382_v48, %v285_v45  ;;  %v583_v55 = vadd.f32 %v582_v51, %v486_v46  ;;  %v301_v45 = vld [vmem:[%s981_s24 + $0x2e8] sm:$0xff]  ;;  %v502_v46 = vmul.f32 %v300_v41, %v300_v41 }
  0xcd   : > { %v384_v56 = vadd.f32 %v383_v52, %v286_v49  ;;  %v584_v59 = vadd.f32 %v583_v55, %v487_v50  ;;  %v302_v49 = vld [vmem:[%s981_s24 + $0x2f0] sm:$0xff]  ;;  %v503_v50 = vmul.f32 %v301_v45, %v301_v45 }
  0xcf   : > { %v385_v60 = vadd.f32 %v384_v56, %v287_v53  ;;  %v585_v63 = vadd.f32 %v584_v59, %v488_v54  ;;  %v303_v53 = vld [vmem:[%s981_s24 + $0x2f8] sm:$0xff]  ;;  %v504_v54 = vmul.f32 %v302_v49, %v302_v49 }
  0xd1   : > { %v386_v0 = vadd.f32 %v385_v60, %v288_v57  ;;  %v586_v3 = vadd.f32 %v585_v63, %v489_v58  ;;  %v304_v57 = vld [vmem:[%s981_s24 + $0x300] sm:$0xff]  ;;  %v505_v58 = vmul.f32 %v303_v53, %v303_v53 }
  0xd3   : > { %v387_v4 = vadd.f32 %v386_v0, %v289_v61  ;;  %v587_v7 = vadd.f32 %v586_v3, %v490_v62  ;;  %v305_v61 = vld [vmem:[%s981_s24 + $0x308] sm:$0xff]  ;;  %v506_v62 = vmul.f32 %v304_v57, %v304_v57 }
  0xd5   : > { %v388_v8 = vadd.f32 %v387_v4, %v290_v1  ;;  %v588_v11 = vadd.f32 %v587_v7, %v491_v2  ;;  %v507_v1 = vmul.f32 %v305_v61, %v305_v61 }
  0xd7   : > { %v389_v12 = vadd.f32 %v388_v8, %v291_v5  ;;  %v589_v15 = vadd.f32 %v588_v11, %v492_v6  ;;  %v873_v6 = vmov 0.0  }
  0xd8   : > { %206 = vst.msk [vmem:[%s194_s27] sm:$0xff] %vm205_vm0, %v873_v6  ;;  %207 = vst.msk [vmem:[%s198_s30] sm:$0xff] %vm205_vm0, %v873_v6 }
  0xd9   : > { %v390_v16 = vadd.f32 %v389_v12, %v292_v9  ;;  %v590_v19 = vadd.f32 %v589_v15, %v493_v10 }
  0xdb   : > { %v391_v20 = vadd.f32 %v390_v16, %v293_v13  ;;  %v591_v23 = vadd.f32 %v590_v19, %v494_v14 }
  0xdd   : > { %v392_v24 = vadd.f32 %v391_v20, %v294_v17  ;;  %v592_v27 = vadd.f32 %v591_v23, %v495_v18 }
  0xdf   : > { %v393_v28 = vadd.f32 %v392_v24, %v295_v21  ;;  %v593_v31 = vadd.f32 %v592_v27, %v496_v22  ;;  %v306_v7 = vld [vmem:[%s194_s27] sm:$0xff] }
  0xe0   : > { %v409_v10 = vld [vmem:[%s198_s30] sm:$0xff] }
  0xe1   : > { %v394_v32 = vadd.f32 %v393_v28, %v296_v25  ;;  %v594_v35 = vadd.f32 %v593_v31, %v497_v26 }
  0xe3   : > { %v395_v36 = vadd.f32 %v394_v32, %v297_v29  ;;  %v595_v39 = vadd.f32 %v594_v35, %v498_v30 }
  0xe5   : > { %v396_v40 = vadd.f32 %v395_v36, %v298_v33  ;;  %v596_v43 = vadd.f32 %v595_v39, %v499_v34 }
  0xe7   : > { %v397_v44 = vadd.f32 %v396_v40, %v299_v37  ;;  %v597_v47 = vadd.f32 %v596_v43, %v500_v38 }
  0xe9   : > { %v398_v48 = vadd.f32 %v397_v44, %v300_v41  ;;  %v598_v51 = vadd.f32 %v597_v47, %v501_v42 }
  0xeb   : > { %v399_v52 = vadd.f32 %v398_v48, %v301_v45  ;;  %v599_v55 = vadd.f32 %v598_v51, %v502_v46 }
  0xed   : > { %v400_v56 = vadd.f32 %v399_v52, %v302_v49  ;;  %v600_v59 = vadd.f32 %v599_v55, %v503_v50 }
  0xef   : > { %v401_v60 = vadd.f32 %v400_v56, %v303_v53  ;;  %v601_v63 = vadd.f32 %v600_v59, %v504_v54 }
  0xf1   : > { %v402_v0 = vadd.f32 %v401_v60, %v304_v57  ;;  %v602_v2 = vadd.f32 %v601_v63, %v505_v58 }
  0xf3   : > { %v403_v3 = vadd.f32 %v402_v0, %v305_v61  ;;  %v603_v4 = vadd.f32 %v602_v2, %v506_v62 }
  0xf5   : > { %404 = vadd.xlane.f32.xlu0 %v403_v3  ;;  %v604_v5 = vadd.f32 %v603_v4, %v507_v1 }
  0xf9   : > { %605 = vadd.xlane.f32.xlu0 %v604_v5 }
 0x182   : > { %v405_v8 = vpop.xlane.xlu0 %404 }
 0x183   : > { %v406_v9 = vadd.f32 %v405_v8, %v306_v7 }
 0x185   : > { %408 = vst.msk [vmem:[%s194_s27] sm:$0xff] %vm205_vm0, %v406_v9 }
 0x186   : > { %v606_v11 = vpop.xlane.xlu0 %605 }
 0x187   : > { %v607_v12 = vadd.f32 %v606_v11, %v409_v10 }
 0x189   : > { %608 = vst.msk [vmem:[%s198_s30] sm:$0xff] %vm205_vm0, %v607_v12 }
 0x18a PF: > { %s16_s14 = sadd.s32 1, %s870_s14   ;;  %s1118_s9 = smov %s854_s10 }
 0x18b   : > { %p13_p9 = scmp.ge.s32.totalorder %s16_s14, 4   ;;  %s1119_s10 = smov %s858_s11 }
 0x18c   : > { %s1120_s11 = smov %s934_s20  ;;  %s1121_s12 = smov %s866_s13 }
 0x18d   : > { %s1122_s13 = smov %s1124_s16  ;;  %15 = sbr.rel (!%p13_p9) target bundleno = 4 (0x4), region = 80 }
 0x194   :  { %642 = vsyncpa [#allocation3], 1 }
 0x195   :  { %644 = vsyncpa [#allocation3 + $0x1], 1 }

</bundles_post_ra>
